<compile_context>
chip_gen: v7x
topology: tpu7x:2x2x1
jax: 0.10.0
libtpu: 0.0.40
codegen_flags: <defaults>
</compile_context>

<pallas_src>
import functools

import jax
import jax.numpy as jnp
from jax.experimental import pallas as pl
from jax.experimental.pallas import tpu as pltpu

LOG_STD_MIN = -5.0
LOG_STD_MAX = 3.0
LN_EPS = 1e-5  # PyTorch nn.LayerNorm default eps


def _round_up(x, m):
    return ((x + m - 1) // m) * m


def _layernorm_onepass(h, gamma, beta):
    """LayerNorm with single-pass statistics: var = E[x^2] - E[x]^2."""
    inv_d = 1.0 / h.shape[-1]
    mu = jnp.sum(h, axis=-1, keepdims=True) * inv_d
    m2 = jnp.sum(h * h, axis=-1, keepdims=True) * inv_d
    var = jnp.maximum(m2 - mu * mu, 0.0)
    return (h - mu) * jax.lax.rsqrt(var + LN_EPS) * gamma + beta


def actor_kernel(
    action_dim,
    x_ref,
    w1_ref, b1_ref, g1_ref, be1_ref,
    w2_ref, b2_ref, g2_ref, be2_ref,
    wh_ref, bh_ref,
    out_ref,
):
    x = x_ref[...]

    # Layer 1: Linear -> LayerNorm -> ReLU
    h = jnp.dot(x, w1_ref[...], preferred_element_type=jnp.float32) + b1_ref[...]
    h = _layernorm_onepass(h, g1_ref[...], be1_ref[...])
    h = jnp.maximum(h, 0.0)

    # Layer 2: Linear -> LayerNorm -> ReLU
    h = jnp.dot(h, w2_ref[...], preferred_element_type=jnp.float32) + b2_ref[...]
    h = _layernorm_onepass(h, g2_ref[...], be2_ref[...])
    h = jnp.maximum(h, 0.0)

    # Fused heads: columns [0:A] = mean, [A:2A] = log_std, rest = zero padding.
    y = jnp.dot(h, wh_ref[...], preferred_element_type=jnp.float32) + bh_ref[...]
    col = jax.lax.broadcasted_iota(jnp.int32, y.shape, 1)
    is_logstd = (col >= action_dim) & (col < 2 * action_dim)
    out_ref[...] = jnp.where(
        is_logstd, jnp.clip(y, LOG_STD_MIN, LOG_STD_MAX), y
    )


@functools.partial(jax.jit, static_argnames=("action_dim",))
def actor_forward(state, params, action_dim):
    (w1, b1, g1, be1, w2, b2, g2, be2, wm, bm, ws, bs) = params
    B, state_dim = state.shape
    hidden = w1.shape[1]

    # Fuse + lane-pad the two heads into one (hidden, HEAD_PAD) matmul.
    head_pad = max(_round_up(2 * action_dim, 128), 128)
    wh = jnp.zeros((hidden, head_pad), jnp.float32)
    wh = wh.at[:, :action_dim].set(wm).at[:, action_dim:2 * action_dim].set(ws)
    bh = jnp.zeros((1, head_pad), jnp.float32)
    bh = bh.at[:, :action_dim].set(bm).at[:, action_dim:2 * action_dim].set(bs)

    # Batch tile: multiple of 8 (sublane), capped so large batches stream through
    # the pipeline rather than living in VMEM at once. (Sweep 512-4096 for big B
    # on v5e/v6e; halve on v7x's 64 MiB VMEM.)
    tb = min(_round_up(B, 8), 1024)
    b_pad = _round_up(B, tb)
    x = state if b_pad == B else jnp.pad(state, ((0, b_pad - B), (0, 0)))
    grid = (b_pad // tb,)

    # VMEM budget (weights resident + double-buffered activation tiles + temps).
    f32 = 4
    weight_bytes = (
        state_dim * hidden + hidden * hidden + hidden * head_pad
        + 6 * hidden + head_pad
    ) * f32
    act_bytes = 2 * 2 * (tb * state_dim + tb * head_pad) * f32  # dbl-buffered I/O
    tmp_bytes = 3 * tb * hidden * f32
    est = 2 * weight_bytes + act_bytes + tmp_bytes
    vmem_limit = min(max(int(est * 1.5), 16 * 2**20), 48 * 2**20)

    cost = pl.CostEstimate(
        flops=2 * b_pad * hidden * (state_dim + hidden + head_pad),
        transcendentals=2 * b_pad,  # one rsqrt per row per LayerNorm
        bytes_accessed=(b_pad * state_dim + b_pad * head_pad) * f32 + weight_bytes,
    )

    resident = lambda shape: pl.BlockSpec(shape, lambda i: (0, 0))
    out = pl.pallas_call(
        functools.partial(actor_kernel, action_dim),
        out_shape=jax.ShapeDtypeStruct((b_pad, head_pad), jnp.float32),
        grid=grid,
        in_specs=[
            pl.BlockSpec((tb, state_dim), lambda i: (i, 0)),   # state tile
            resident((state_dim, hidden)),                     # w1
            resident((1, hidden)), resident((1, hidden)), resident((1, hidden)),  # b1,g1,be1
            resident((hidden, hidden)),                        # w2
            resident((1, hidden)), resident((1, hidden)), resident((1, hidden)),  # b2,g2,be2
            resident((hidden, head_pad)),                      # fused head weight
            resident((1, head_pad)),                           # fused head bias
        ],
        out_specs=pl.BlockSpec((tb, head_pad), lambda i: (i, 0)),
        compiler_params=pltpu.CompilerParams(
            dimension_semantics=("parallel",),
            vmem_limit_bytes=vmem_limit,
        ),
        cost_estimate=cost,
    )(x, w1, b1, g1, be1, w2, b2, g2, be2, wh, bh)

    mean = out[:B, :action_dim]
    log_std = out[:B, action_dim:2 * action_dim]
    return mean, log_std


def orthogonal_init(key, in_dim, out_dim, gain=1.0):
    """Deterministic orthogonal init (same spirit as nn.init.orthogonal_)."""
    n = max(in_dim, out_dim)
    a = jax.random.normal(key, (n, n), dtype=jnp.float32)
    q, r = jnp.linalg.qr(a)
    sign = jnp.sign(jnp.diag(r))
    sign = jnp.where(sign == 0, 1.0, sign)  # guard against zero diagonal
    q = q * sign[None, :]
    return (gain * q[:in_dim, :out_dim]).astype(jnp.float32)


def make_actor_params(key, state_dim, action_dim, hidden_dim):
    # TODO(synk): for large hidden dims on v6e/v7x, store the matmul weights as
    # bfloat16 (MXU-native) and keep LN/ReLU math in f32; kept f32 here so the
    # 1e-4 self-test tolerance holds.
    k1, k2, k3, k4 = jax.random.split(key, 4)
    w1 = orthogonal_init(k1, state_dim, hidden_dim, gain=1.0)
    b1 = jnp.zeros((1, hidden_dim), jnp.float32)
    g1 = jnp.ones((1, hidden_dim), jnp.float32)    # LayerNorm weight
    be1 = jnp.zeros((1, hidden_dim), jnp.float32)  # LayerNorm bias

    w2 = orthogonal_init(k2, hidden_dim, hidden_dim, gain=1.0)
    b2 = jnp.zeros((1, hidden_dim), jnp.float32)
    g2 = jnp.ones((1, hidden_dim), jnp.float32)
    be2 = jnp.zeros((1, hidden_dim), jnp.float32)

    wm = orthogonal_init(k3, hidden_dim, action_dim, gain=0.1)
    bm = jnp.zeros((1, action_dim), jnp.float32)
    ws = orthogonal_init(k4, hidden_dim, action_dim, gain=0.1)
    bs = jnp.zeros((1, action_dim), jnp.float32)

    return (w1, b1, g1, be1, w2, b2, g2, be2, wm, bm, ws, bs)


def reference_forward(state, params):
    """Pure-JAX reference matching PyTorch's LayerNorm formulation."""
    (w1, b1, g1, be1, w2, b2, g2, be2, wm, bm, ws, bs) = params

    def ln(h, gamma, beta):
        mu = jnp.mean(h, axis=-1, keepdims=True)
        var = jnp.mean((h - mu) ** 2, axis=-1, keepdims=True)
        return (h - mu) * jax.lax.rsqrt(var + LN_EPS) * gamma + beta

    h = state @ w1 + b1
    h = jnp.maximum(ln(h, g1, be1), 0.0)
    h = h @ w2 + b2
    h = jnp.maximum(ln(h, g2, be2), 0.0)
    mean = h @ wm + bm
    log_std = jnp.clip(h @ ws + bs, LOG_STD_MIN, LOG_STD_MAX)
    return mean, log_std


if __name__ == "__main__":
    # Small, forward-consistent shapes.
    B, STATE_DIM, ACTION_DIM, HIDDEN_DIM = 2, 16, 8, 32

    key = jax.random.PRNGKey(0)
    k_state, k_params = jax.random.split(key)
    state = jax.random.normal(k_state, (B, STATE_DIM), dtype=jnp.float32)
    params = make_actor_params(k_params, STATE_DIM, ACTION_DIM, HIDDEN_DIM)

    mean, log_std = actor_forward(state, params, ACTION_DIM)
    jax.block_until_ready((mean, log_std))

    mean_ref, log_std_ref = reference_forward(state, params)
    assert mean.shape == (B, ACTION_DIM) and log_std.shape == (B, ACTION_DIM)
    # 1e-4 tolerance: kernel uses one-pass LN statistics (E[x^2] - E[x]^2).
    assert jnp.allclose(mean, mean_ref, atol=1e-4, rtol=1e-4)
    assert jnp.allclose(log_std, log_std_ref, atol=1e-4, rtol=1e-4)
    assert bool(jnp.all(log_std >= LOG_STD_MIN)) and bool(jnp.all(log_std <= LOG_STD_MAX))

    # TODO(synk): Actor.sample() (rsample + tanh squash + log_prob correction) is a
    # stochastic host-side method and is not part of forward(); not implemented in-kernel.
    print("KERNEL_OK")
</pallas_src>

<mosaic_0001>
module attributes {stable_mosaic.version = 11 : i64} {
  func.func @actor_kernel(%arg0: i32, %arg1: memref<8x16xf32, #tpu.memory_space<vmem>>, %arg2: memref<16x32xf32, #tpu.memory_space<vmem>>, %arg3: memref<1x32xf32, #tpu.memory_space<vmem>>, %arg4: memref<1x32xf32, #tpu.memory_space<vmem>>, %arg5: memref<1x32xf32, #tpu.memory_space<vmem>>, %arg6: memref<32x32xf32, #tpu.memory_space<vmem>>, %arg7: memref<1x32xf32, #tpu.memory_space<vmem>>, %arg8: memref<1x32xf32, #tpu.memory_space<vmem>>, %arg9: memref<1x32xf32, #tpu.memory_space<vmem>>, %arg10: memref<32x128xf32, #tpu.memory_space<vmem>>, %arg11: memref<1x128xf32, #tpu.memory_space<vmem>>, %arg12: memref<8x128xf32, #tpu.memory_space<vmem>>) attributes {dimension_semantics = [#tpu.dimension_semantics<parallel>], iteration_bounds = array<i64: 1>, scalar_prefetch = 0 : i64, scratch_operands = 0 : i64, tpu.core_type = #tpu.core_type<tc>, window_params = [{transform_indices = @transform_0, window_bounds = array<i64: 8, 16>}, {pipeline_mode = #tpu.pipeline_mode<synchronous>, transform_indices = @transform_1, window_bounds = array<i64: 16, 32>}, {pipeline_mode = #tpu.pipeline_mode<synchronous>, transform_indices = @transform_2, window_bounds = array<i64: 1, 32>}, {pipeline_mode = #tpu.pipeline_mode<synchronous>, transform_indices = @transform_3, window_bounds = array<i64: 1, 32>}, {pipeline_mode = #tpu.pipeline_mode<synchronous>, transform_indices = @transform_4, window_bounds = array<i64: 1, 32>}, {pipeline_mode = #tpu.pipeline_mode<synchronous>, transform_indices = @transform_5, window_bounds = array<i64: 32, 32>}, {pipeline_mode = #tpu.pipeline_mode<synchronous>, transform_indices = @transform_6, window_bounds = array<i64: 1, 32>}, {pipeline_mode = #tpu.pipeline_mode<synchronous>, transform_indices = @transform_7, window_bounds = array<i64: 1, 32>}, {pipeline_mode = #tpu.pipeline_mode<synchronous>, transform_indices = @transform_8, window_bounds = array<i64: 1, 32>}, {pipeline_mode = #tpu.pipeline_mode<synchronous>, transform_indices = @transform_9, window_bounds = array<i64: 32, 128>}, {pipeline_mode = #tpu.pipeline_mode<synchronous>, transform_indices = @transform_10, window_bounds = array<i64: 1, 128>}, {transform_indices = @transform_11, window_bounds = array<i64: 8, 128>}]} {
    %c0 = arith.constant 0 : index
    %c0_0 = arith.constant 0 : index
    %0 = vector.load %arg1[%c0, %c0_0] : memref<8x16xf32, #tpu.memory_space<vmem>>, vector<8x16xf32>
    %c0_1 = arith.constant 0 : index
    %c0_2 = arith.constant 0 : index
    %1 = vector.load %arg2[%c0_1, %c0_2] : memref<16x32xf32, #tpu.memory_space<vmem>>, vector<16x32xf32>
    %cst = arith.constant dense<0.000000e+00> : vector<8x32xf32>
    %2 = tpu.matmul %0, %1, %cst {dimension_numbers = #tpu.dot_dimension_numbers<[1], [0], [0], [1], [0, 0, 1, 1], [], []>} : vector<8x16xf32>, vector<16x32xf32>, vector<8x32xf32> -> vector<8x32xf32>
    %c0_3 = arith.constant 0 : index
    %c0_4 = arith.constant 0 : index
    %3 = vector.load %arg3[%c0_3, %c0_4] : memref<1x32xf32, #tpu.memory_space<vmem>>, vector<1x32xf32>
    %4 = vector.broadcast %3 : vector<1x32xf32> to vector<8x32xf32>
    %5 = arith.addf %2, %4 : vector<8x32xf32>
    %c0_5 = arith.constant 0 : index
    %c0_6 = arith.constant 0 : index
    %6 = vector.load %arg4[%c0_5, %c0_6] : memref<1x32xf32, #tpu.memory_space<vmem>>, vector<1x32xf32>
    %c0_7 = arith.constant 0 : index
    %c0_8 = arith.constant 0 : index
    %7 = vector.load %arg5[%c0_7, %c0_8] : memref<1x32xf32, #tpu.memory_space<vmem>>, vector<1x32xf32>
    %cst_9 = arith.constant dense<0.000000e+00> : vector<8xf32>
    %8 = vector.multi_reduction <add>, %5, %cst_9 [1] : vector<8x32xf32> to vector<8xf32>
    %9 = vector.shape_cast %8 : vector<8xf32> to vector<8x1xf32>
    %cst_10 = arith.constant 3.125000e-02 : f32
    %10 = vector.broadcast %cst_10 : f32 to vector<8x1xf32>
    %11 = arith.mulf %9, %10 : vector<8x1xf32>
    %12 = arith.mulf %5, %5 : vector<8x32xf32>
    %cst_11 = arith.constant dense<0.000000e+00> : vector<8xf32>
    %13 = vector.multi_reduction <add>, %12, %cst_11 [1] : vector<8x32xf32> to vector<8xf32>
    %14 = vector.shape_cast %13 : vector<8xf32> to vector<8x1xf32>
    %cst_12 = arith.constant 3.125000e-02 : f32
    %15 = vector.broadcast %cst_12 : f32 to vector<8x1xf32>
    %16 = arith.mulf %14, %15 : vector<8x1xf32>
    %17 = arith.mulf %11, %11 : vector<8x1xf32>
    %18 = arith.subf %16, %17 : vector<8x1xf32>
    %cst_13 = arith.constant 0.000000e+00 : f32
    %19 = vector.broadcast %cst_13 : f32 to vector<8x1xf32>
    %20 = arith.maximumf %18, %19 : vector<8x1xf32>
    %21 = vector.broadcast %11 : vector<8x1xf32> to vector<8x32xf32>
    %22 = arith.subf %5, %21 : vector<8x32xf32>
    %cst_14 = arith.constant 9.99999974E-6 : f32
    %23 = vector.broadcast %cst_14 : f32 to vector<8x1xf32>
    %24 = arith.addf %20, %23 : vector<8x1xf32>
    %25 = math.rsqrt %24 : vector<8x1xf32>
    %26 = vector.broadcast %25 : vector<8x1xf32> to vector<8x32xf32>
    %27 = arith.mulf %22, %26 : vector<8x32xf32>
    %28 = vector.broadcast %6 : vector<1x32xf32> to vector<8x32xf32>
    %29 = arith.mulf %27, %28 : vector<8x32xf32>
    %30 = vector.broadcast %7 : vector<1x32xf32> to vector<8x32xf32>
    %31 = arith.addf %29, %30 : vector<8x32xf32>
    %cst_15 = arith.constant 0.000000e+00 : f32
    %32 = vector.broadcast %cst_15 : f32 to vector<8x32xf32>
    %33 = arith.maximumf %31, %32 : vector<8x32xf32>
    %c0_16 = arith.constant 0 : index
    %c0_17 = arith.constant 0 : index
    %34 = vector.load %arg6[%c0_16, %c0_17] : memref<32x32xf32, #tpu.memory_space<vmem>>, vector<32x32xf32>
    %cst_18 = arith.constant dense<0.000000e+00> : vector<8x32xf32>
    %35 = tpu.matmul %33, %34, %cst_18 {dimension_numbers = #tpu.dot_dimension_numbers<[1], [0], [0], [1], [0, 0, 1, 1], [], []>} : vector<8x32xf32>, vector<32x32xf32>, vector<8x32xf32> -> vector<8x32xf32>
    %c0_19 = arith.constant 0 : index
    %c0_20 = arith.constant 0 : index
    %36 = vector.load %arg7[%c0_19, %c0_20] : memref<1x32xf32, #tpu.memory_space<vmem>>, vector<1x32xf32>
    %37 = vector.broadcast %36 : vector<1x32xf32> to vector<8x32xf32>
    %38 = arith.addf %35, %37 : vector<8x32xf32>
    %c0_21 = arith.constant 0 : index
    %c0_22 = arith.constant 0 : index
    %39 = vector.load %arg8[%c0_21, %c0_22] : memref<1x32xf32, #tpu.memory_space<vmem>>, vector<1x32xf32>
    %c0_23 = arith.constant 0 : index
    %c0_24 = arith.constant 0 : index
    %40 = vector.load %arg9[%c0_23, %c0_24] : memref<1x32xf32, #tpu.memory_space<vmem>>, vector<1x32xf32>
    %cst_25 = arith.constant dense<0.000000e+00> : vector<8xf32>
    %41 = vector.multi_reduction <add>, %38, %cst_25 [1] : vector<8x32xf32> to vector<8xf32>
    %42 = vector.shape_cast %41 : vector<8xf32> to vector<8x1xf32>
    %cst_26 = arith.constant 3.125000e-02 : f32
    %43 = vector.broadcast %cst_26 : f32 to vector<8x1xf32>
    %44 = arith.mulf %42, %43 : vector<8x1xf32>
    %45 = arith.mulf %38, %38 : vector<8x32xf32>
    %cst_27 = arith.constant dense<0.000000e+00> : vector<8xf32>
    %46 = vector.multi_reduction <add>, %45, %cst_27 [1] : vector<8x32xf32> to vector<8xf32>
    %47 = vector.shape_cast %46 : vector<8xf32> to vector<8x1xf32>
    %cst_28 = arith.constant 3.125000e-02 : f32
    %48 = vector.broadcast %cst_28 : f32 to vector<8x1xf32>
    %49 = arith.mulf %47, %48 : vector<8x1xf32>
    %50 = arith.mulf %44, %44 : vector<8x1xf32>
    %51 = arith.subf %49, %50 : vector<8x1xf32>
    %cst_29 = arith.constant 0.000000e+00 : f32
    %52 = vector.broadcast %cst_29 : f32 to vector<8x1xf32>
    %53 = arith.maximumf %51, %52 : vector<8x1xf32>
    %54 = vector.broadcast %44 : vector<8x1xf32> to vector<8x32xf32>
    %55 = arith.subf %38, %54 : vector<8x32xf32>
    %cst_30 = arith.constant 9.99999974E-6 : f32
    %56 = vector.broadcast %cst_30 : f32 to vector<8x1xf32>
    %57 = arith.addf %53, %56 : vector<8x1xf32>
    %58 = math.rsqrt %57 : vector<8x1xf32>
    %59 = vector.broadcast %58 : vector<8x1xf32> to vector<8x32xf32>
    %60 = arith.mulf %55, %59 : vector<8x32xf32>
    %61 = vector.broadcast %39 : vector<1x32xf32> to vector<8x32xf32>
    %62 = arith.mulf %60, %61 : vector<8x32xf32>
    %63 = vector.broadcast %40 : vector<1x32xf32> to vector<8x32xf32>
    %64 = arith.addf %62, %63 : vector<8x32xf32>
    %cst_31 = arith.constant 0.000000e+00 : f32
    %65 = vector.broadcast %cst_31 : f32 to vector<8x32xf32>
    %66 = arith.maximumf %64, %65 : vector<8x32xf32>
    %c0_32 = arith.constant 0 : index
    %c0_33 = arith.constant 0 : index
    %67 = vector.load %arg10[%c0_32, %c0_33] : memref<32x128xf32, #tpu.memory_space<vmem>>, vector<32x128xf32>
    %cst_34 = arith.constant dense<0.000000e+00> : vector<8x128xf32>
    %68 = tpu.matmul %66, %67, %cst_34 {dimension_numbers = #tpu.dot_dimension_numbers<[1], [0], [0], [1], [0, 0, 1, 1], [], []>} : vector<8x32xf32>, vector<32x128xf32>, vector<8x128xf32> -> vector<8x128xf32>
    %c0_35 = arith.constant 0 : index
    %c0_36 = arith.constant 0 : index
    %69 = vector.load %arg11[%c0_35, %c0_36] : memref<1x128xf32, #tpu.memory_space<vmem>>, vector<1x128xf32>
    %70 = vector.broadcast %69 : vector<1x128xf32> to vector<8x128xf32>
    %71 = arith.addf %68, %70 : vector<8x128xf32>
    %72 = tpu.iota {dimensions = array<i32: 1>} : vector<8x128xi32>
    %c8_i32 = arith.constant 8 : i32
    %73 = vector.broadcast %c8_i32 : i32 to vector<8x128xi32>
    %74 = arith.cmpi sge, %72, %73 : vector<8x128xi32>
    %c16_i32 = arith.constant 16 : i32
    %75 = vector.broadcast %c16_i32 : i32 to vector<8x128xi32>
    %76 = arith.cmpi slt, %72, %75 : vector<8x128xi32>
    %77 = arith.andi %74, %76 : vector<8x128xi1>
    %cst_37 = arith.constant -5.000000e+00 : f32
    %cst_38 = arith.constant 3.000000e+00 : f32
    %78 = vector.broadcast %cst_37 : f32 to vector<8x128xf32>
    %79 = arith.maximumf %78, %71 : vector<8x128xf32>
    %80 = vector.broadcast %cst_38 : f32 to vector<8x128xf32>
    %81 = arith.minimumf %80, %79 : vector<8x128xf32>
    %82 = arith.select %77, %81, %71 : vector<8x128xi1>, vector<8x128xf32>
    %c0_39 = arith.constant 0 : index
    %c0_40 = arith.constant 0 : index
    %83 = vector.load %arg12[%c0_39, %c0_40] : memref<8x128xf32, #tpu.memory_space<vmem>>, vector<8x128xf32>
    tpu.vector_store %arg12[%c0_39, %c0_40], %82 {strides = array<i32>} : memref<8x128xf32, #tpu.memory_space<vmem>>, vector<8x128xf32>,
    return
  }
  func.func @transform_0(%arg0: i32) -> (i32, i32) {
    %c0_i32 = arith.constant 0 : i32
    %c0_i32_0 = arith.constant 0 : i32
    return %arg0, %c0_i32 : i32, i32
  }
  func.func @transform_1(%arg0: i32) -> (i32, i32) {
    %c0_i32 = arith.constant 0 : i32
    %c0_i32_0 = arith.constant 0 : i32
    %c0_i32_1 = arith.constant 0 : i32
    return %c0_i32, %c0_i32_0 : i32, i32
  }
  func.func @transform_2(%arg0: i32) -> (i32, i32) {
    %c0_i32 = arith.constant 0 : i32
    %c0_i32_0 = arith.constant 0 : i32
    %c0_i32_1 = arith.constant 0 : i32
    return %c0_i32, %c0_i32_0 : i32, i32
  }
  func.func @transform_3(%arg0: i32) -> (i32, i32) {
    %c0_i32 = arith.constant 0 : i32
    %c0_i32_0 = arith.constant 0 : i32
    %c0_i32_1 = arith.constant 0 : i32
    return %c0_i32, %c0_i32_0 : i32, i32
  }
  func.func @transform_4(%arg0: i32) -> (i32, i32) {
    %c0_i32 = arith.constant 0 : i32
    %c0_i32_0 = arith.constant 0 : i32
    %c0_i32_1 = arith.constant 0 : i32
    return %c0_i32, %c0_i32_0 : i32, i32
  }
  func.func @transform_5(%arg0: i32) -> (i32, i32) {
    %c0_i32 = arith.constant 0 : i32
    %c0_i32_0 = arith.constant 0 : i32
    %c0_i32_1 = arith.constant 0 : i32
    return %c0_i32, %c0_i32_0 : i32, i32
  }
  func.func @transform_6(%arg0: i32) -> (i32, i32) {
    %c0_i32 = arith.constant 0 : i32
    %c0_i32_0 = arith.constant 0 : i32
    %c0_i32_1 = arith.constant 0 : i32
    return %c0_i32, %c0_i32_0 : i32, i32
  }
  func.func @transform_7(%arg0: i32) -> (i32, i32) {
    %c0_i32 = arith.constant 0 : i32
    %c0_i32_0 = arith.constant 0 : i32
    %c0_i32_1 = arith.constant 0 : i32
    return %c0_i32, %c0_i32_0 : i32, i32
  }
  func.func @transform_8(%arg0: i32) -> (i32, i32) {
    %c0_i32 = arith.constant 0 : i32
    %c0_i32_0 = arith.constant 0 : i32
    %c0_i32_1 = arith.constant 0 : i32
    return %c0_i32, %c0_i32_0 : i32, i32
  }
  func.func @transform_9(%arg0: i32) -> (i32, i32) {
    %c0_i32 = arith.constant 0 : i32
    %c0_i32_0 = arith.constant 0 : i32
    %c0_i32_1 = arith.constant 0 : i32
    return %c0_i32, %c0_i32_0 : i32, i32
  }
  func.func @transform_10(%arg0: i32) -> (i32, i32) {
    %c0_i32 = arith.constant 0 : i32
    %c0_i32_0 = arith.constant 0 : i32
    %c0_i32_1 = arith.constant 0 : i32
    return %c0_i32, %c0_i32_0 : i32, i32
  }
  func.func @transform_11(%arg0: i32) -> (i32, i32) {
    %c0_i32 = arith.constant 0 : i32
    %c0_i32_0 = arith.constant 0 : i32
    return %arg0, %c0_i32 : i32, i32
  }
}

</mosaic_0001>

<bundles_post_ra>
// kernel: actor_forward.1
= control target key start
LH: loop header
LB: loop body
LE: loop exit
PB: predicated region body
PF: predicated region fallthrough
CT: control target
= control target key end

     0   :  { %v444_v0 = vmov 0.0|0.0   ;;  %vm445_vm0 = vmmov 0   ;;  %v446_v3 = vmov 0.0   ;;  %vm48_vm1 = vcmask 130048   ;;  %s575_s1 = inlined_call_operand.vmem [shape: f32[16,32], index: 1, kind: input, shape index: {}]   ;;  %s576_s0 = inlined_call_operand.vmem [shape: f32[8,16], index: 0, kind: input, shape index: {}]   ;;  %s577_s2 = inlined_call_operand.vmem [shape: f32[1,32], index: 2, kind: input, shape index: {}]   ;;  %s578_s5 = inlined_call_operand.vmem [shape: f32[32,32], index: 5, kind: input, shape index: {}]   ;;  %s579_s3 = inlined_call_operand.vmem [shape: f32[1,32], index: 3, kind: input, shape index: {}]   ;;  %s580_s4 = inlined_call_operand.vmem [shape: f32[1,32], index: 4, kind: input, shape index: {}]   ;;  %s581_s6 = inlined_call_operand.vmem [shape: f32[1,32], index: 6, kind: input, shape index: {}]   ;;  %s582_s9 = inlined_call_operand.vmem [shape: f32[32,128], index: 9, kind: input, shape index: {}]   ;;  %s583_s7 = inlined_call_operand.vmem [shape: f32[1,32], index: 7, kind: input, shape index: {}]   ;;  %s584_s8 = inlined_call_operand.vmem [shape: f32[1,32], index: 8, kind: input, shape index: {}]   ;;  %s585_s10 = inlined_call_operand.vmem [shape: f32[1,128], index: 10, kind: input, shape index: {}]   ;;  %s586_s11 = inlined_call_operand.vmem [shape: f32[8,128], index: 11, kind: output, shape index: {}]  }
   0x1   :  { %422 = vmatprep.subr.bf16.mxu0 %v444_v0  ;;  %v39_v1 = vld [vmem:[%s575_s1] sm:$0xff]  ;;  %v40_v2 = vld [vmem:[%s575_s1 + $0x8] sm:$0xff]  ;;  %397 = vmatprep.mubr.msk.f32.mxu0 %vm445_vm0, %v446_v3  ;;  %vm124_vm2 = vcmask 261120   ;;  %v158_v15 = vld [vmem:[%s578_s5 + $0x10] sm:$0xff] }
   0x2   :  { %v423_v4 = vpack.c.bf16 %v40_v2, %v39_v1  ;;  %425 = vmatprep.subr.bf16.mxu1 %v444_v0  ;;  %408 = vmatprep.mubr.msk.f32.mxu1 %vm445_vm0, %v446_v3  ;;  %v38_v5 = vld [vmem:[%s576_s0] sm:$0xff]  ;;  %v157_v14 = vld [vmem:[%s578_s5 + $0x8] sm:$0xff]  ;;  %v159_v17 = vld [vmem:[%s578_s5 + $0x18] sm:$0xff] }
   0x3   :  { %v370_v6 = vld [vmem:[%s577_s2] ss:$0 sm:$0xff]  ;;  %v429_v18 = vpack.c.bf16 %v159_v17, %v158_v15  ;;  %v274_v43 = vld [vmem:[%s582_s9 + $0x8] sm:$0xff]  ;;  %v275_v45 = vld [vmem:[%s582_s9 + $0x10] sm:$0xff] }
   0x4   :  { %424 = vmatpush3.bf16.msra.mxu0 %v423_v4  ;;  %v156_v13 = vld [vmem:[%s578_s5] sm:$0xff]  ;;  %v276_v46 = vld [vmem:[%s582_s9 + $0x18] sm:$0xff] }
   0x5   :  { %431 = vmatprep.subr.bf16.mxu0 %v444_v0  ;;  %v426_v16 = vpack.c.bf16 %v157_v14, %v156_v13  ;;  %v372_v29 = vld [vmem:[%s579_s3] ss:$0 sm:$0xff]  ;;  %v435_v47 = vpack.c.bf16 %v276_v46, %v275_v45 }
   0x6   :  { %v373_v31 = vld [vmem:[%s580_s4] ss:$0 sm:$0xff] }
   0x7   :  { %398 = vmatmul.mubr.msk.f32.vlgmr.msra.gmra.mrb[0].mxu0 %vm48_vm1, %v38_v5  ;;  %427 = vmatpush3.bf16.msra.mxu1 %v426_v16  ;;  %v374_v35 = vld [vmem:[%s581_s6] ss:$0 sm:$0xff] }
   0x8   :  { %419 = vmatprep.mubr.msk.f32.mxu0 %vm445_vm0, %v446_v3  ;;  %428 = vmatprep.subr.bf16.mxu1 %v444_v0  ;;  %v273_v42 = vld [vmem:[%s582_s9] sm:$0xff] }
   0x9   :  { %v432_v44 = vpack.c.bf16 %v274_v43, %v273_v42  ;;  %v376_v58 = vld [vmem:[%s583_s7] ss:$0 sm:$0xff] }
   0xa   :  { %v377_v60 = vld [vmem:[%s584_s8] ss:$0 sm:$0xff] }
   0xb   :  { %430 = vmatpush3.bf16.msra.mxu1 %v429_v18  ;;  %433 = vmatpush3.bf16.msra.mxu0 %v432_v44  ;;  %v378_v2 = vld [vmem:[%s585_s10] ss:$0 sm:$0xff] }
   0xc   :  { %434 = vmatprep.subr.bf16.mxu0 %v444_v0  ;;  %v357_v0 = vlaneseq }
   0xe   :  { %v358_v1 = vand.u32 127, %v357_v0 }
   0xf   :  { %436 = vmatpush3.bf16.msra.mxu0 %v435_v47 }
  0x10   :  { %vm359_vm3 = vcmp.ge.s32.totalorder %v358_v1, 8  ;;  %vm360_vm4 = vcmp.lt.s32.totalorder %v358_v1, 16 }
  0x11   :  { %vm361_vm5 = vmand %vm359_vm3, %vm360_vm4 }
  0xda   :  { %v118_v7 = vpop.f32.mrb[0].mxu0 }
  0xdb   :  { %v119_v8 = vadd.f32 %v370_v6, %v118_v7  ;;  %v399_v9 = vpop.f32.mrb[1].mxu0 }
  0xdd   :  { %v125_v10 = vsel %vm124_vm2, %v119_v8, 0.0  ;;  %v129_v11 = vmul.f32 %v119_v8, %v119_v8 }
  0xde   :  { %126 = vadd.xlane.f32.xlu0 %v125_v10 }
  0xdf   :  { %v130_v12 = vsel %vm124_vm2, %v129_v11, 0.0 }
  0xe2   :  { %131 = vadd.xlane.f32.xlu0 %v130_v12 }
 0x16b   :  { %v127_v19 = vpop.xlane.xlu0 %126 }
 0x16c   :  { %v128_v20 = vmul.f32 0.03125, %v127_v19 }
 0x16e   :  { %v134_v22 = vmul.f32 %v128_v20, %v128_v20  ;;  %v137_v27 = vsub.f32 %v119_v8, %v128_v20 }
 0x16f   :  { %v132_v21 = vpop.xlane.xlu0 %131 }
 0x170   :  { %v133_v23 = vmul.f32 0.03125, %v132_v21 }
 0x172   :  { %v135_v24 = vsub.f32 %v133_v23, %v134_v22 }
 0x174   :  { %v136_v25 = vmax.f32 %v135_v24, 0.0 }
 0x176   :  { %v138_v26 = vadd.f32 1e-05, %v136_v25 }
 0x178   :  { %440 = vrsqrt.f32 %v138_v26 }
 0x182   :  { %v441_v28 = vpop.eup %440 }
 0x183   :  { %v140_v30 = vmul.f32 %v441_v28, %v137_v27 }
 0x185   :  { %v147_v32 = vmul.f32 %v372_v29, %v140_v30 }
 0x187   :  { %v154_v33 = vadd.f32 %v373_v31, %v147_v32 }
 0x189   :  { %v155_v34 = vmax.f32 %v154_v33, 0.0 }
 0x18b   :  { %409 = vmatmul.mubr.msk.f32.vlgmr.msra.gmra.mrb[0].mxu1 %vm124_vm2, %v155_v34 }
 0x25e   :  { %v236_v36 = vpop.f32.mrb[0].mxu1 }
 0x25f   :  { %v237_v37 = vadd.f32 %v374_v35, %v236_v36  ;;  %v410_v38 = vpop.f32.mrb[1].mxu1 }
 0x261   :  { %v242_v39 = vsel %vm124_vm2, %v237_v37, 0.0  ;;  %v246_v40 = vmul.f32 %v237_v37, %v237_v37 }
 0x262   :  { %243 = vadd.xlane.f32.xlu1 %v242_v39 }
 0x263   :  { %v247_v41 = vsel %vm124_vm2, %v246_v40, 0.0 }
 0x266   :  { %248 = vadd.xlane.f32.xlu1 %v247_v41 }
 0x2ef   :  { %v244_v48 = vpop.xlane.xlu1 %243 }
 0x2f0   :  { %v245_v49 = vmul.f32 0.03125, %v244_v48 }
 0x2f2   :  { %v251_v51 = vmul.f32 %v245_v49, %v245_v49  ;;  %v254_v56 = vsub.f32 %v237_v37, %v245_v49 }
 0x2f3   :  { %v249_v50 = vpop.xlane.xlu1 %248 }
 0x2f4   :  { %v250_v52 = vmul.f32 0.03125, %v249_v50 }
 0x2f6   :  { %v252_v53 = vsub.f32 %v250_v52, %v251_v51 }
 0x2f8   :  { %v253_v54 = vmax.f32 %v252_v53, 0.0 }
 0x2fa   :  { %v255_v55 = vadd.f32 1e-05, %v253_v54 }
 0x2fc   :  { %442 = vrsqrt.f32 %v255_v55 }
 0x306   :  { %v443_v57 = vpop.eup %442 }
 0x307   :  { %v257_v59 = vmul.f32 %v443_v57, %v254_v56 }
 0x309   :  { %v264_v61 = vmul.f32 %v376_v58, %v257_v59 }
 0x30b   :  { %v271_v62 = vadd.f32 %v377_v60, %v264_v61 }
 0x30d   :  { %v272_v63 = vmax.f32 %v271_v62, 0.0 }
 0x30f   :  { %420 = vmatmul.mubr.msk.f32.vlgmr.msra.gmra.mrb[2].mxu0 %vm124_vm2, %v272_v63 }
 0x3e2   :  { %v353_v3 = vpop.f32.mrb[2].mxu0 }
 0x3e3   :  { %v354_v4 = vadd.f32 %v378_v2, %v353_v3  ;;  %v421_v5 = vpop.f32.mrb[3].mxu0 }
 0x3e5   :  { %v362_v6 = vmax.f32 %v354_v4, -5.0 }
 0x3e7   :  { %v363_v7 = vmin.f32 %v362_v6, 3.0 }
 0x3e9   :  { %v364_v8 = vsel %vm361_vm5, %v363_v7, %v354_v4 }
 0x3ea   :  { %365 = vst [vmem:[%s586_s11] sm:$0xff] %v364_v8 }

</bundles_post_ra>
